<compile_context>
chip_gen: v7x
topology: tpu7x:2x2x1
jax: 0.10.0
libtpu: 0.0.40
codegen_flags: <defaults>
</compile_context>

<pallas_src>
import functools

import jax
import jax.numpy as jnp
from jax.experimental import pallas as pl
from jax.experimental.pallas import tpu as pltpu


def _mlp_kernel(x_ref, w1_ref, b1_ref, w2t_ref, b2_ref, o_ref):
    # x_ref  : (B, 1)   input column                         (VMEM)
    # w1_ref : (1, H)   layer-1 weights                      (VMEM)
    # b1_ref : (1, H)   layer-1 bias                         (VMEM)
    # w2t_ref: (1, H)   layer-2 weights, transposed          (VMEM)
    # b2_ref : (1, 1)   layer-2 scalar bias                  (SMEM)
    # o_ref  : (B, 1)   output column                        (VMEM)
    x = x_ref[...]                                               # (B, 1)

    # Layer 1: K=1 matmul == outer product -> broadcast multiply, fused bias + ReLU.
    h = jnp.maximum(x * w1_ref[...] + b1_ref[...], 0.0)         # (B, H)

    # Layer 2: N=1 matmul == row reduction -> multiply + cross-lane sum.
    y = jnp.sum(h * w2t_ref[...], axis=-1, keepdims=True)       # (B, 1)

    o_ref[...] = y + b2_ref[0, 0]                                # scalar bias from SMEM


def prepare_params(w1, b1, w2, b2):
    """One-time (outside the jitted forward) layout prep of the Linear params.

    Returns rows (1, H) for w1 / b1 / w2^T and a (1, 1) scalar for b2.
    """
    in_features, hidden = w1.shape
    hidden2, out_features = w2.shape
    assert in_features == 1 and out_features == 1, "kernel specialized for 1 -> hidden -> 1"
    assert hidden2 == hidden

    f32 = jnp.float32
    w1_row = w1.reshape(1, hidden).astype(f32)
    b1_row = b1.reshape(1, hidden).astype(f32)
    w2t_row = w2.reshape(hidden, 1).T.astype(f32)
    b2_s = b2.reshape(1, 1).astype(f32)
    return w1_row, b1_row, w2t_row, b2_s


@jax.jit
def nn_forward(x, w1_row, b1_row, w2t_row, b2_s):
    """Fused MLP forward: relu(x @ w1 + b1) @ w2 + b2 (in_features == out_features == 1)."""
    batch, in_features = x.shape
    assert in_features == 1

    vmem = pltpu.MemorySpace.VMEM
    smem = pltpu.MemorySpace.SMEM

    return pl.pallas_call(
        _mlp_kernel,
        out_shape=jax.ShapeDtypeStruct((batch, 1), jnp.float32),
        in_specs=[
            pl.BlockSpec(memory_space=vmem),   # x       (B, 1)
            pl.BlockSpec(memory_space=vmem),   # w1 row  (1, H)
            pl.BlockSpec(memory_space=vmem),   # b1 row  (1, H)
            pl.BlockSpec(memory_space=vmem),   # w2^T    (1, H)
            pl.BlockSpec(memory_space=smem),   # b2      (1, 1) scalar
        ],
        out_specs=pl.BlockSpec(memory_space=vmem),
    )(x.astype(jnp.float32), w1_row, b1_row, w2t_row, b2_s)


def init_params(key, in_features, hidden, out_features):
    """Deterministic init mimicking PyTorch nn.Linear's U(-1/sqrt(fan_in), 1/sqrt(fan_in))."""
    k1, k2, k3, k4 = jax.random.split(key, 4)
    bound1 = 1.0 / jnp.sqrt(jnp.float32(in_features))
    bound2 = 1.0 / jnp.sqrt(jnp.float32(hidden))
    w1 = jax.random.uniform(k1, (in_features, hidden), jnp.float32, -bound1, bound1)
    b1 = jax.random.uniform(k2, (1, hidden), jnp.float32, -bound1, bound1)
    w2 = jax.random.uniform(k3, (hidden, out_features), jnp.float32, -bound2, bound2)
    b2 = jax.random.uniform(k4, (1, out_features), jnp.float32, -bound2, bound2)
    return w1, b1, w2, b2


if __name__ == "__main__":
    # Matches the reference script: x = unsqueeze(linspace(-1, 1, 200), dim=1) -> (200, 1)
    in_features, hidden, out_features = 1, 32, 1
    batch = 200

    key = jax.random.PRNGKey(0)
    x = jnp.linspace(-1.0, 1.0, batch, dtype=jnp.float32).reshape(batch, 1)
    w1, b1, w2, b2 = init_params(key, in_features, hidden, out_features)

    # One-time parameter layout prep (hoisted out of the per-call path).
    w1_row, b1_row, w2t_row, b2_s = prepare_params(w1, b1, w2, b2)

    out = nn_forward(x, w1_row, b1_row, w2t_row, b2_s)
    jax.block_until_ready(out)

    # Reference check in plain JAX
    ref = jnp.maximum(x @ w1 + b1, 0.0) @ w2 + b2
    assert out.shape == (batch, out_features)
    assert jnp.allclose(out, ref, atol=1e-5, rtol=1e-5)

    print("KERNEL_OK")
</pallas_src>

<mosaic_0001>
module attributes {stable_mosaic.version = 11 : i64} {
  func.func @_mlp_kernel(%arg0: memref<200x1xf32, #tpu.memory_space<vmem>>, %arg1: memref<1x32xf32, #tpu.memory_space<vmem>>, %arg2: memref<1x32xf32, #tpu.memory_space<vmem>>, %arg3: memref<1x32xf32, #tpu.memory_space<vmem>>, %arg4: memref<1x1xf32, #tpu.memory_space<smem>>, %arg5: memref<200x1xf32, #tpu.memory_space<vmem>>) attributes {dimension_semantics = [], scalar_prefetch = 0 : i64, scratch_operands = 0 : i64, tpu.core_type = #tpu.core_type<tc>} {
    %c0 = arith.constant 0 : index
    %c0_0 = arith.constant 0 : index
    %0 = vector.load %arg0[%c0, %c0_0] : memref<200x1xf32, #tpu.memory_space<vmem>>, vector<200x1xf32>
    %c0_1 = arith.constant 0 : index
    %c0_2 = arith.constant 0 : index
    %1 = vector.load %arg1[%c0_1, %c0_2] : memref<1x32xf32, #tpu.memory_space<vmem>>, vector<1x32xf32>
    %2 = vector.broadcast %0 : vector<200x1xf32> to vector<200x32xf32>
    %3 = vector.broadcast %1 : vector<1x32xf32> to vector<200x32xf32>
    %4 = arith.mulf %2, %3 : vector<200x32xf32>
    %c0_3 = arith.constant 0 : index
    %c0_4 = arith.constant 0 : index
    %5 = vector.load %arg2[%c0_3, %c0_4] : memref<1x32xf32, #tpu.memory_space<vmem>>, vector<1x32xf32>
    %6 = vector.broadcast %5 : vector<1x32xf32> to vector<200x32xf32>
    %7 = arith.addf %4, %6 : vector<200x32xf32>
    %cst = arith.constant 0.000000e+00 : f32
    %8 = vector.broadcast %cst : f32 to vector<200x32xf32>
    %9 = arith.maximumf %7, %8 : vector<200x32xf32>
    %c0_5 = arith.constant 0 : index
    %c0_6 = arith.constant 0 : index
    %10 = vector.load %arg3[%c0_5, %c0_6] : memref<1x32xf32, #tpu.memory_space<vmem>>, vector<1x32xf32>
    %11 = vector.broadcast %10 : vector<1x32xf32> to vector<200x32xf32>
    %12 = arith.mulf %9, %11 : vector<200x32xf32>
    %cst_7 = arith.constant dense<0.000000e+00> : vector<200xf32>
    %13 = vector.multi_reduction <add>, %12, %cst_7 [1] : vector<200x32xf32> to vector<200xf32>
    %14 = vector.shape_cast %13 : vector<200xf32> to vector<200x1xf32>
    %c0_8 = arith.constant 0 : index
    %c0_9 = arith.constant 0 : index
    %15 = memref.load %arg4[%c0_8, %c0_9] : memref<1x1xf32, #tpu.memory_space<smem>>
    %16 = vector.broadcast %15 : f32 to vector<200x1xf32>
    %17 = arith.addf %14, %16 : vector<200x1xf32>
    %c0_10 = arith.constant 0 : index
    %c0_11 = arith.constant 0 : index
    %18 = vector.load %arg5[%c0_10, %c0_11] : memref<200x1xf32, #tpu.memory_space<vmem>>, vector<200x1xf32>
    tpu.vector_store %arg5[%c0_10, %c0_11], %17 {strides = array<i32>} : memref<200x1xf32, #tpu.memory_space<vmem>>, vector<200x1xf32>,
    return
  }
}

</mosaic_0001>

<bundles_post_ra>
// kernel: nn_forward.1
= control target key start
LH: loop header
LB: loop body
LE: loop exit
PB: predicated region body
PF: predicated region fallthrough
CT: control target
= control target key end

     0   :  { %v431_v0 = vmov 0   ;;  %vm292_vm0 = vcmask 261120   ;;  %vm395_vm1 = vcmask 7168   ;;  %s782_s0 = inlined_call_operand.vmem [shape: f32[200,1], index: 0, kind: input, shape index: {}]   ;;  %s783_s1 = inlined_call_operand.vmem [shape: f32[1,32], index: 1, kind: input, shape index: {}]   ;;  %s784_s2 = inlined_call_operand.vmem [shape: f32[1,32], index: 2, kind: input, shape index: {}]   ;;  %s785_s3 = inlined_call_operand.vmem [shape: f32[1,32], index: 3, kind: input, shape index: {}]   ;;  %s786_s4 = inlined_call_operand.<no memory space> [shape: f32[1,1], index: 4, kind: input, shape index: {}]   ;;  %s787_s5 = inlined_call_operand.vmem [shape: f32[200,1], index: 5, kind: output, shape index: {}]  }
   0x1   :  { %430 = vset.pattern.permute.xlu1 %v431_v0  ;;  %429 = vset.pattern.permute.xlu0 %v431_v0  ;;  %v23_v1 = vld [vmem:[%s782_s0 + $0x10] sm:$0xff]  ;;  %v21_v2 = vld [vmem:[%s782_s0] sm:$0xff]  ;;  %v24_v3 = vld [vmem:[%s782_s0 + $0x18] sm:$0xff] }
   0x2   :  { %59 = vperm.xlu1 %430, %v23_v1   ;;  %49 = vperm.xlu0 %429, %v21_v2   ;;  %v22_v4 = vld [vmem:[%s782_s0 + $0x8] sm:$0xff]  ;;  %v25_v6 = vld [vmem:[%s782_s0 + $0x20] sm:$0xff]  ;;  %v28_v7 = vld [vmem:[%s782_s0 + $0x38] sm:$0xff] }
   0x3   :  { %v26_v5 = vld [vmem:[%s782_s0 + $0x28] sm:$0xff]  ;;  %v27_v8 = vld [vmem:[%s782_s0 + $0x30] sm:$0xff]  ;;  %v29_v10 = vld [vmem:[%s782_s0 + $0x40] sm:$0xff] }
   0x4   :  { %v30_v9 = vld [vmem:[%s782_s0 + $0x48] sm:$0xff]  ;;  %v32_v11 = vld [vmem:[%s782_s0 + $0x58] sm:$0xff]  ;;  %v31_v12 = vld [vmem:[%s782_s0 + $0x50] sm:$0xff] }
   0x5   :  { %v34_v13 = vld [vmem:[%s782_s0 + $0x68] sm:$0xff]  ;;  %v33_v14 = vld [vmem:[%s782_s0 + $0x60] sm:$0xff]  ;;  %v36_v15 = vld [vmem:[%s782_s0 + $0x78] sm:$0xff] }
   0x6   :  { %64 = vperm.xlu1 %430, %v24_v3   ;;  %54 = vperm.xlu0 %429, %v22_v4   ;;  %v35_v16 = vld [vmem:[%s782_s0 + $0x70] sm:$0xff]  ;;  %v38_v17 = vld [vmem:[%s782_s0 + $0x88] sm:$0xff]  ;;  %v37_v18 = vld [vmem:[%s782_s0 + $0x80] sm:$0xff] }
   0x7   :  { %v40_v19 = vld [vmem:[%s782_s0 + $0x98] sm:$0xff]  ;;  %v39_v20 = vld [vmem:[%s782_s0 + $0x90] sm:$0xff]  ;;  %v42_v21 = vld [vmem:[%s782_s0 + $0xa8] sm:$0xff] }
   0x8   :  { %v41_v22 = vld [vmem:[%s782_s0 + $0xa0] sm:$0xff]  ;;  %v44_v23 = vld [vmem:[%s782_s0 + $0xb8] sm:$0xff]  ;;  %v43_v24 = vld [vmem:[%s782_s0 + $0xb0] sm:$0xff] }
   0x9   :  { %v45_v25 = vld [vmem:[%s782_s0 + $0xc0] sm:$0xff] }
   0xa   :  { %74 = vperm.xlu1 %430, %v26_v5   ;;  %69 = vperm.xlu0 %429, %v25_v6   ;;  %v540_v26 = vld [vmem:[%s783_s1] ss:$0 sm:$0xff] }
   0xb   :  { %v545_v27 = vld [vmem:[%s784_s2] ss:$0 sm:$0xff] }
   0xc   :  { %v554_v36 = vld [vmem:[%s785_s3] ss:$0 sm:$0xff] }
   0xe   :  { %84 = vperm.xlu1 %430, %v28_v7   ;;  %79 = vperm.xlu0 %429, %v27_v8  }
  0x12   :  { %94 = vperm.xlu1 %430, %v30_v9   ;;  %89 = vperm.xlu0 %429, %v29_v10  }
  0x16   :  { %104 = vperm.xlu1 %430, %v32_v11   ;;  %99 = vperm.xlu0 %429, %v31_v12  }
  0x1a   :  { %114 = vperm.xlu1 %430, %v34_v13   ;;  %109 = vperm.xlu0 %429, %v33_v14  }
  0x1e   :  { %124 = vperm.xlu1 %430, %v36_v15   ;;  %119 = vperm.xlu0 %429, %v35_v16  }
  0x22   :  { %134 = vperm.xlu1 %430, %v38_v17   ;;  %129 = vperm.xlu0 %429, %v37_v18  }
  0x26   :  { %144 = vperm.xlu1 %430, %v40_v19   ;;  %139 = vperm.xlu0 %429, %v39_v20  }
  0x2a   :  { %154 = vperm.xlu1 %430, %v42_v21   ;;  %149 = vperm.xlu0 %429, %v41_v22  }
  0x2e   :  { %164 = vperm.xlu1 %430, %v44_v23   ;;  %159 = vperm.xlu0 %429, %v43_v24  }
  0x32   :  { %169 = vperm.xlu0 %429, %v45_v25  }
  0x81   :  { %v60_v28 = vpop.permute.xlu1 %59  ;;  %v50_v29 = vpop.permute.xlu0 %49 }
  0x82   :  { %v180_v30 = vmul.f32 %v540_v26, %v60_v28  ;;  %v178_v31 = vmul.f32 %v540_v26, %v50_v29 }
  0x84   :  { %v210_v32 = vadd.f32 %v545_v27, %v178_v31  ;;  %v212_v33 = vadd.f32 %v545_v27, %v180_v30 }
  0x85   :  { %v65_v34 = vpop.permute.xlu1 %64  ;;  %v55_v35 = vpop.permute.xlu0 %54 }
  0x86   :  { %v235_v37 = vmax.f32 %v210_v32, 0.0  ;;  %v181_v38 = vmul.f32 %v540_v26, %v65_v34  ;;  %v179_v39 = vmul.f32 %v540_v26, %v55_v35  ;;  %v237_v43 = vmax.f32 %v212_v33, 0.0 }
  0x88   :  { %v213_v40 = vadd.f32 %v545_v27, %v181_v38  ;;  %v211_v41 = vadd.f32 %v545_v27, %v179_v39  ;;  %v267_v42 = vmul.f32 %v554_v36, %v235_v37  ;;  %v269_v57 = vmul.f32 %v554_v36, %v237_v43 }
  0x89   :  { %v75_v44 = vpop.permute.xlu1 %74  ;;  %v70_v45 = vpop.permute.xlu0 %69 }
  0x8a   :  { %v238_v46 = vmax.f32 %v213_v40, 0.0  ;;  %v236_v47 = vmax.f32 %v211_v41, 0.0  ;;  %v183_v48 = vmul.f32 %v540_v26, %v75_v44  ;;  %v182_v49 = vmul.f32 %v540_v26, %v70_v45 }
  0x8b   :  { %v293_v50 = vsel %vm292_vm0, %v267_v42, 0.0  ;;  %v299_v5 = vsel %vm292_vm0, %v269_v57, 0.0 }
  0x8c   :  { %v215_v51 = vadd.f32 %v545_v27, %v183_v48  ;;  %v214_v52 = vadd.f32 %v545_v27, %v182_v49  ;;  %294 = vadd.xlane.f32.xlu1 %v293_v50  ;;  %v270_v53 = vmul.f32 %v554_v36, %v238_v46  ;;  %v268_v54 = vmul.f32 %v554_v36, %v236_v47 }
  0x8d   :  { %v85_v55 = vpop.permute.xlu1 %84  ;;  %v80_v56 = vpop.permute.xlu0 %79 }
  0x8e   :  { %v240_v58 = vmax.f32 %v215_v51, 0.0  ;;  %v185_v59 = vmul.f32 %v540_v26, %v85_v55  ;;  %v184_v60 = vmul.f32 %v540_v26, %v80_v56  ;;  %v239_v61 = vmax.f32 %v214_v52, 0.0 }
  0x8f   :  { %v302_v62 = vsel %vm292_vm0, %v270_v53, 0.0  ;;  %v296_v63 = vsel %vm292_vm0, %v268_v54, 0.0 }
  0x90   :  { %v217_v0 = vadd.f32 %v545_v27, %v185_v59  ;;  %v216_v1 = vadd.f32 %v545_v27, %v184_v60  ;;  %303 = vadd.xlane.f32.xlu1 %v302_v62  ;;  %297 = vadd.xlane.f32.xlu0 %v296_v63  ;;  %v272_v2 = vmul.f32 %v554_v36, %v240_v58 }
  0x91   :  { %v95_v3 = vpop.permute.xlu1 %94  ;;  %v90_v4 = vpop.permute.xlu0 %89  ;;  %v271_v11 = vmul.f32 %v554_v36, %v239_v61 }
  0x92   :  { %v242_v6 = vmax.f32 %v217_v0, 0.0  ;;  %v187_v7 = vmul.f32 %v540_v26, %v95_v3  ;;  %v186_v8 = vmul.f32 %v540_v26, %v90_v4  ;;  %v241_v9 = vmax.f32 %v216_v1, 0.0 }
  0x93   :  { %v308_v10 = vsel %vm292_vm0, %v272_v2, 0.0  ;;  %v305_v22 = vsel %vm292_vm0, %v271_v11, 0.0 }
  0x94   :  { %v219_v12 = vadd.f32 %v545_v27, %v187_v7  ;;  %v218_v13 = vadd.f32 %v545_v27, %v186_v8  ;;  %309 = vadd.xlane.f32.xlu1 %v308_v10  ;;  %300 = vadd.xlane.f32.xlu0 %v299_v5  ;;  %v274_v14 = vmul.f32 %v554_v36, %v242_v6 }
  0x95   :  { %v105_v15 = vpop.permute.xlu1 %104  ;;  %v100_v16 = vpop.permute.xlu0 %99  ;;  %v273_v23 = vmul.f32 %v554_v36, %v241_v9 }
  0x96   :  { %v244_v17 = vmax.f32 %v219_v12, 0.0  ;;  %v189_v18 = vmul.f32 %v540_v26, %v105_v15  ;;  %v188_v19 = vmul.f32 %v540_v26, %v100_v16  ;;  %v243_v20 = vmax.f32 %v218_v13, 0.0 }
  0x97   :  { %v314_v21 = vsel %vm292_vm0, %v274_v14, 0.0  ;;  %v311_v37 = vsel %vm292_vm0, %v273_v23, 0.0 }
  0x98   :  { %v221_v24 = vadd.f32 %v545_v27, %v189_v18  ;;  %v220_v25 = vadd.f32 %v545_v27, %v188_v19  ;;  %315 = vadd.xlane.f32.xlu1 %v314_v21  ;;  %306 = vadd.xlane.f32.xlu0 %v305_v22  ;;  %v276_v28 = vmul.f32 %v554_v36, %v244_v17 }
  0x99   :  { %v115_v29 = vpop.permute.xlu1 %114  ;;  %v110_v30 = vpop.permute.xlu0 %109  ;;  %v275_v38 = vmul.f32 %v554_v36, %v243_v20 }
  0x9a   :  { %v246_v31 = vmax.f32 %v221_v24, 0.0  ;;  %v191_v32 = vmul.f32 %v540_v26, %v115_v29  ;;  %v190_v33 = vmul.f32 %v540_v26, %v110_v30  ;;  %v245_v34 = vmax.f32 %v220_v25, 0.0 }
  0x9b   :  { %v320_v35 = vsel %vm292_vm0, %v276_v28, 0.0  ;;  %v317_v49 = vsel %vm292_vm0, %v275_v38, 0.0 }
  0x9c   :  { %v223_v39 = vadd.f32 %v545_v27, %v191_v32  ;;  %v222_v40 = vadd.f32 %v545_v27, %v190_v33  ;;  %321 = vadd.xlane.f32.xlu1 %v320_v35  ;;  %312 = vadd.xlane.f32.xlu0 %v311_v37  ;;  %v278_v41 = vmul.f32 %v554_v36, %v246_v31 }
  0x9d   :  { %v125_v42 = vpop.permute.xlu1 %124  ;;  %v120_v43 = vpop.permute.xlu0 %119  ;;  %v277_v50 = vmul.f32 %v554_v36, %v245_v34 }
  0x9e   :  { %v248_v44 = vmax.f32 %v223_v39, 0.0  ;;  %v193_v45 = vmul.f32 %v540_v26, %v125_v42  ;;  %v192_v46 = vmul.f32 %v540_v26, %v120_v43  ;;  %v247_v47 = vmax.f32 %v222_v40, 0.0 }
  0x9f   :  { %v326_v48 = vsel %vm292_vm0, %v278_v41, 0.0  ;;  %v323_v61 = vsel %vm292_vm0, %v277_v50, 0.0 }
  0xa0   :  { %v225_v51 = vadd.f32 %v545_v27, %v193_v45  ;;  %v224_v52 = vadd.f32 %v545_v27, %v192_v46  ;;  %327 = vadd.xlane.f32.xlu1 %v326_v48  ;;  %318 = vadd.xlane.f32.xlu0 %v317_v49  ;;  %v280_v53 = vmul.f32 %v554_v36, %v248_v44 }
  0xa1   :  { %v135_v54 = vpop.permute.xlu1 %134  ;;  %v130_v55 = vpop.permute.xlu0 %129  ;;  %v279_v62 = vmul.f32 %v554_v36, %v247_v47 }
  0xa2   :  { %v250_v56 = vmax.f32 %v225_v51, 0.0  ;;  %v195_v57 = vmul.f32 %v540_v26, %v135_v54  ;;  %v194_v58 = vmul.f32 %v540_v26, %v130_v55  ;;  %v249_v59 = vmax.f32 %v224_v52, 0.0 }
  0xa3   :  { %v332_v60 = vsel %vm292_vm0, %v280_v53, 0.0  ;;  %v329_v9 = vsel %vm292_vm0, %v279_v62, 0.0  ;;  %v655_v55 = vstv %s786_s4 }
  0xa4   :  { %v227_v63 = vadd.f32 %v545_v27, %v195_v57  ;;  %v226_v0 = vadd.f32 %v545_v27, %v194_v58  ;;  %333 = vadd.xlane.f32.xlu1 %v332_v60  ;;  %324 = vadd.xlane.f32.xlu0 %v323_v61  ;;  %v282_v1 = vmul.f32 %v554_v36, %v250_v56 }
  0xa5   :  { %v145_v2 = vpop.permute.xlu1 %144  ;;  %v140_v3 = vpop.permute.xlu0 %139  ;;  %v281_v10 = vmul.f32 %v554_v36, %v249_v59 }
  0xa6   :  { %v252_v4 = vmax.f32 %v227_v63, 0.0  ;;  %v197_v5 = vmul.f32 %v540_v26, %v145_v2  ;;  %v196_v6 = vmul.f32 %v540_v26, %v140_v3  ;;  %v251_v7 = vmax.f32 %v226_v0, 0.0 }
  0xa7   :  { %v338_v8 = vsel %vm292_vm0, %v282_v1, 0.0  ;;  %v335_v21 = vsel %vm292_vm0, %v281_v10, 0.0 }
  0xa8   :  { %v229_v11 = vadd.f32 %v545_v27, %v197_v5  ;;  %v228_v12 = vadd.f32 %v545_v27, %v196_v6  ;;  %339 = vadd.xlane.f32.xlu1 %v338_v8  ;;  %330 = vadd.xlane.f32.xlu0 %v329_v9  ;;  %v284_v13 = vmul.f32 %v554_v36, %v252_v4 }
  0xa9   :  { %v155_v14 = vpop.permute.xlu1 %154  ;;  %v150_v15 = vpop.permute.xlu0 %149  ;;  %v283_v22 = vmul.f32 %v554_v36, %v251_v7 }
  0xaa   :  { %v254_v16 = vmax.f32 %v229_v11, 0.0  ;;  %v199_v17 = vmul.f32 %v540_v26, %v155_v14  ;;  %v198_v18 = vmul.f32 %v540_v26, %v150_v15  ;;  %v253_v19 = vmax.f32 %v228_v12, 0.0 }
  0xab   :  { %v344_v20 = vsel %vm292_vm0, %v284_v13, 0.0  ;;  %v341_v35 = vsel %vm292_vm0, %v283_v22, 0.0 }
  0xac   :  { %v231_v23 = vadd.f32 %v545_v27, %v199_v17  ;;  %v230_v24 = vadd.f32 %v545_v27, %v198_v18  ;;  %345 = vadd.xlane.f32.xlu1 %v344_v20  ;;  %336 = vadd.xlane.f32.xlu0 %v335_v21  ;;  %v286_v25 = vmul.f32 %v554_v36, %v254_v16 }
  0xad   :  { %v165_v28 = vpop.permute.xlu1 %164  ;;  %v160_v29 = vpop.permute.xlu0 %159  ;;  %v285_v37 = vmul.f32 %v554_v36, %v253_v19 }
  0xae   :  { %v256_v30 = vmax.f32 %v231_v23, 0.0  ;;  %v201_v31 = vmul.f32 %v540_v26, %v165_v28  ;;  %v200_v32 = vmul.f32 %v540_v26, %v160_v29  ;;  %v255_v33 = vmax.f32 %v230_v24, 0.0 }
  0xaf   :  { %v350_v34 = vsel %vm292_vm0, %v286_v25, 0.0  ;;  %v347_v46 = vsel %vm292_vm0, %v285_v37, 0.0 }
  0xb0   :  { %v233_v38 = vadd.f32 %v545_v27, %v201_v31  ;;  %v232_v39 = vadd.f32 %v545_v27, %v200_v32  ;;  %351 = vadd.xlane.f32.xlu1 %v350_v34  ;;  %342 = vadd.xlane.f32.xlu0 %v341_v35  ;;  %v288_v40 = vmul.f32 %v554_v36, %v256_v30 }
  0xb1   :  { %v170_v41 = vpop.permute.xlu0 %169  ;;  %v287_v47 = vmul.f32 %v554_v36, %v255_v33 }
  0xb2   :  { %v258_v42 = vmax.f32 %v233_v38, 0.0  ;;  %v202_v43 = vmul.f32 %v540_v26, %v170_v41  ;;  %v356_v44 = vsel %vm292_vm0, %v288_v40, 0.0  ;;  %v257_v45 = vmax.f32 %v232_v39, 0.0 }
  0xb3   :  { %v353_v52 = vsel %vm292_vm0, %v287_v47, 0.0 }
  0xb4   :  { %v234_v48 = vadd.f32 %v545_v27, %v202_v43  ;;  %357 = vadd.xlane.f32.xlu1 %v356_v44  ;;  %348 = vadd.xlane.f32.xlu0 %v347_v46  ;;  %v290_v49 = vmul.f32 %v554_v36, %v258_v42  ;;  %v289_v26 = vmul.f32 %v554_v36, %v257_v45 }
  0xb6   :  { %v362_v50 = vsel %vm292_vm0, %v290_v49, 0.0  ;;  %v259_v51 = vmax.f32 %v234_v48, 0.0  ;;  %v359_v53 = vsel %vm292_vm0, %v289_v26, 0.0 }
  0xb8   :  { %363 = vadd.xlane.f32.xlu1 %v362_v50  ;;  %354 = vadd.xlane.f32.xlu0 %v353_v52  ;;  %v291_v54 = vmul.f32 %v554_v36, %v259_v51 }
  0xba   :  { %v365_v27 = vsel %vm292_vm0, %v291_v54, 0.0 }
  0xbc   :  { %360 = vadd.xlane.f32.xlu0 %v359_v53 }
  0xc0   :  { %366 = vadd.xlane.f32.xlu0 %v365_v27 }
 0x119   :  { %v295_v56 = vpop.xlane.xlu1 %294 }
 0x11a   :  { %v370_v57 = vadd.f32 %v655_v55, %v295_v56 }
 0x11c   :  { %396 = vst.msk [vmem:[%s787_s5] sm:$0xff] %vm395_vm1, %v370_v57 }
 0x11d   :  { %v304_v58 = vpop.xlane.xlu1 %303  ;;  %v298_v36 = vpop.xlane.xlu0 %297 }
 0x11e   :  { %v373_v59 = vadd.f32 %v655_v55, %v304_v58  ;;  %v371_v60 = vadd.f32 %v655_v55, %v298_v36 }
 0x120   :  { %399 = vst.msk [vmem:[%s787_s5 + $0x18] sm:$0xff] %vm395_vm1, %v373_v59  ;;  %397 = vst.msk [vmem:[%s787_s5 + $0x8] sm:$0xff] %vm395_vm1, %v371_v60 }
 0x121   :  { %v310_v61 = vpop.xlane.xlu1 %309  ;;  %v301_v62 = vpop.xlane.xlu0 %300 }
 0x122   :  { %v375_v63 = vadd.f32 %v655_v55, %v310_v61  ;;  %v372_v0 = vadd.f32 %v655_v55, %v301_v62 }
 0x124   :  { %401 = vst.msk [vmem:[%s787_s5 + $0x28] sm:$0xff] %vm395_vm1, %v375_v63  ;;  %398 = vst.msk [vmem:[%s787_s5 + $0x10] sm:$0xff] %vm395_vm1, %v372_v0 }
 0x125   :  { %v316_v1 = vpop.xlane.xlu1 %315  ;;  %v307_v2 = vpop.xlane.xlu0 %306 }
 0x126   :  { %v377_v3 = vadd.f32 %v655_v55, %v316_v1  ;;  %v374_v4 = vadd.f32 %v655_v55, %v307_v2 }
 0x128   :  { %403 = vst.msk [vmem:[%s787_s5 + $0x38] sm:$0xff] %vm395_vm1, %v377_v3  ;;  %400 = vst.msk [vmem:[%s787_s5 + $0x20] sm:$0xff] %vm395_vm1, %v374_v4 }
 0x129   :  { %v322_v5 = vpop.xlane.xlu1 %321  ;;  %v313_v6 = vpop.xlane.xlu0 %312 }
 0x12a   :  { %v379_v7 = vadd.f32 %v655_v55, %v322_v5  ;;  %v376_v8 = vadd.f32 %v655_v55, %v313_v6 }
 0x12c   :  { %405 = vst.msk [vmem:[%s787_s5 + $0x48] sm:$0xff] %vm395_vm1, %v379_v7  ;;  %402 = vst.msk [vmem:[%s787_s5 + $0x30] sm:$0xff] %vm395_vm1, %v376_v8 }
 0x12d   :  { %v328_v9 = vpop.xlane.xlu1 %327  ;;  %v319_v10 = vpop.xlane.xlu0 %318 }
 0x12e   :  { %v381_v11 = vadd.f32 %v655_v55, %v328_v9  ;;  %v378_v12 = vadd.f32 %v655_v55, %v319_v10 }
 0x130   :  { %407 = vst.msk [vmem:[%s787_s5 + $0x58] sm:$0xff] %vm395_vm1, %v381_v11  ;;  %404 = vst.msk [vmem:[%s787_s5 + $0x40] sm:$0xff] %vm395_vm1, %v378_v12 }
 0x131   :  { %v334_v13 = vpop.xlane.xlu1 %333  ;;  %v325_v14 = vpop.xlane.xlu0 %324 }
 0x132   :  { %v383_v15 = vadd.f32 %v655_v55, %v334_v13  ;;  %v380_v16 = vadd.f32 %v655_v55, %v325_v14 }
 0x134   :  { %409 = vst.msk [vmem:[%s787_s5 + $0x68] sm:$0xff] %vm395_vm1, %v383_v15  ;;  %406 = vst.msk [vmem:[%s787_s5 + $0x50] sm:$0xff] %vm395_vm1, %v380_v16 }
 0x135   :  { %v340_v17 = vpop.xlane.xlu1 %339  ;;  %v331_v18 = vpop.xlane.xlu0 %330 }
 0x136   :  { %v385_v19 = vadd.f32 %v655_v55, %v340_v17  ;;  %v382_v20 = vadd.f32 %v655_v55, %v331_v18 }
 0x138   :  { %411 = vst.msk [vmem:[%s787_s5 + $0x78] sm:$0xff] %vm395_vm1, %v385_v19  ;;  %408 = vst.msk [vmem:[%s787_s5 + $0x60] sm:$0xff] %vm395_vm1, %v382_v20 }
 0x139   :  { %v346_v21 = vpop.xlane.xlu1 %345  ;;  %v337_v22 = vpop.xlane.xlu0 %336 }
 0x13a   :  { %v387_v23 = vadd.f32 %v655_v55, %v346_v21  ;;  %v384_v24 = vadd.f32 %v655_v55, %v337_v22 }
 0x13c   :  { %413 = vst.msk [vmem:[%s787_s5 + $0x88] sm:$0xff] %vm395_vm1, %v387_v23  ;;  %410 = vst.msk [vmem:[%s787_s5 + $0x70] sm:$0xff] %vm395_vm1, %v384_v24 }
 0x13d   :  { %v352_v25 = vpop.xlane.xlu1 %351  ;;  %v343_v28 = vpop.xlane.xlu0 %342 }
 0x13e   :  { %v389_v29 = vadd.f32 %v655_v55, %v352_v25  ;;  %v386_v30 = vadd.f32 %v655_v55, %v343_v28 }
 0x140   :  { %415 = vst.msk [vmem:[%s787_s5 + $0x98] sm:$0xff] %vm395_vm1, %v389_v29  ;;  %412 = vst.msk [vmem:[%s787_s5 + $0x80] sm:$0xff] %vm395_vm1, %v386_v30 }
 0x141   :  { %v358_v31 = vpop.xlane.xlu1 %357  ;;  %v349_v32 = vpop.xlane.xlu0 %348 }
 0x142   :  { %v391_v33 = vadd.f32 %v655_v55, %v358_v31  ;;  %v388_v34 = vadd.f32 %v655_v55, %v349_v32 }
 0x144   :  { %417 = vst.msk [vmem:[%s787_s5 + $0xa8] sm:$0xff] %vm395_vm1, %v391_v33  ;;  %414 = vst.msk [vmem:[%s787_s5 + $0x90] sm:$0xff] %vm395_vm1, %v388_v34 }
 0x145   :  { %v364_v35 = vpop.xlane.xlu1 %363  ;;  %v355_v37 = vpop.xlane.xlu0 %354 }
 0x146   :  { %v393_v38 = vadd.f32 %v655_v55, %v364_v35  ;;  %v390_v39 = vadd.f32 %v655_v55, %v355_v37 }
 0x148   :  { %419 = vst.msk [vmem:[%s787_s5 + $0xb8] sm:$0xff] %vm395_vm1, %v393_v38  ;;  %416 = vst.msk [vmem:[%s787_s5 + $0xa0] sm:$0xff] %vm395_vm1, %v390_v39 }
 0x149   :  { %v361_v40 = vpop.xlane.xlu0 %360 }
 0x14a   :  { %v392_v41 = vadd.f32 %v655_v55, %v361_v40 }
 0x14c   :  { %418 = vst.msk [vmem:[%s787_s5 + $0xb0] sm:$0xff] %vm395_vm1, %v392_v41 }
 0x14d   :  { %v367_v42 = vpop.xlane.xlu0 %366 }
 0x14e   :  { %v394_v43 = vadd.f32 %v655_v55, %v367_v42 }
 0x150   :  { %420 = vst.msk [vmem:[%s787_s5 + $0xc0] sm:$0xff] %vm395_vm1, %v394_v43 }

</bundles_post_ra>
